<compile_context>
chip_gen: v7x
topology: tpu7x:2x2x1
jax: 0.10.0
libtpu: 0.0.40
codegen_flags: <defaults>
</compile_context>

<pallas_src>
import functools

import jax
import jax.numpy as jnp
from jax.experimental import pallas as pl
from jax.experimental.pallas import tpu as pltpu

_LANE = 128
_TARGET_TILE_BYTES = 2 << 20   # ~2 MiB per block; x2 buffers x (in+out) ~= 8 MiB VMEM


def _make_reluk_kernel(k):
    """Elementwise relu(x)**k on one (tile_rows, lanes) VMEM tile."""
    def _kernel(x_ref, o_ref):
        x = x_ref[...]
        y = jnp.maximum(x, jnp.zeros_like(x))            # VPU max
        if isinstance(k, int) and k == 1:
            o_ref[...] = y.astype(o_ref.dtype)
        elif isinstance(k, int) and k > 1:
            # integer power via exponentiation-by-squaring, accumulated in f32
            base = y.astype(jnp.float32)
            result = None
            e = k
            while e > 0:
                if e & 1:
                    result = base if result is None else result * base
                e >>= 1
                if e:
                    base = base * base
            o_ref[...] = result.astype(o_ref.dtype)
        else:
            # generic (non-integer) exponent; base >= 0 so pow is well defined
            o_ref[...] = (y.astype(jnp.float32) ** k).astype(o_ref.dtype)
    return _kernel


def _is_dual_tensorcore() -> bool:
    """True on chips with 2 TensorCores sharing the parallel grid (v7x)."""
    try:
        kind = jax.devices()[0].device_kind.lower()
        return "v7" in kind
    except Exception:  # pragma: no cover - be conservative off-TPU
        return False


def _round_up(a: int, m: int) -> int:
    return ((a + m - 1) // m) * m


def reluk_forward(x: jax.Array, k: int = 1) -> jax.Array:
    """Matches the PyTorch forward: maximum(zeros_like(x), x) ** k."""
    orig_shape = x.shape
    if x.size == 0:
        return x
    if isinstance(k, int) and k == 0:
        # maximum(0, x) ** 0 == 1 everywhere (torch/numpy define 0**0 == 1)
        return jnp.ones_like(x)

    flat = x.reshape(-1)                   # keep native dtype in HBM
    n = flat.shape[0]
    itemsize = jnp.dtype(x.dtype).itemsize
    sublane = max(8, 32 // max(1, itemsize))   # 8 f32, 16 bf16, 32 int8/fp8

    prefix = (n // _LANE) * _LANE          # 128-aligned prefix handled by the kernel
    tail_n = n - prefix

    if prefix == 0:
        # Tiny input: the kernel would be pure overhead.
        return (jnp.maximum(jnp.zeros_like(x), x) ** k).astype(x.dtype)

    # Widest lane-dense slab (multiple of 128) that divides the aligned prefix.
    lanes = _LANE
    for w in (1024, 512, 256):
        if prefix % w == 0:
            lanes = w
            break
    rows = prefix // lanes

    # Byte-budgeted tile rows, rounded to the dtype's sublane multiple.
    dual_tc = _is_dual_tensorcore()
    if rows <= sublane:
        tile_rows = rows                   # full-extent block (always legal)
    else:
        budget_rows = max(
            sublane,
            (_TARGET_TILE_BYTES // (lanes * itemsize)) // sublane * sublane,
        )
        if rows <= budget_rows and not dual_tc:
            tile_rows = rows               # single full-extent block, no masking
        else:
            if dual_tc:
                # v7x: even, >=2-step grid so both TensorCores stream halves.
                steps = max(2, pl.cdiv(rows, budget_rows))
                if steps % 2:
                    steps += 1
            else:
                steps = pl.cdiv(rows, budget_rows)
            tile_rows = max(sublane, _round_up(pl.cdiv(rows, steps), sublane))

    grid = (pl.cdiv(rows, tile_rows),)

    slab_src = flat if tail_n == 0 else flat[:prefix]
    slab = slab_src.reshape(rows, lanes)

    out_slab = pl.pallas_call(
        _make_reluk_kernel(k),
        out_shape=jax.ShapeDtypeStruct((rows, lanes), x.dtype),
        grid=grid,
        in_specs=[pl.BlockSpec((tile_rows, lanes), lambda i: (i, 0))],
        out_specs=pl.BlockSpec((tile_rows, lanes), lambda i: (i, 0)),
        compiler_params=pltpu.CompilerParams(
            dimension_semantics=("parallel",),
            vmem_limit_bytes=32 << 20,
            allow_input_fusion=[True],     # let the prefix slice fuse in
        ),
    )(slab)

    out_flat = out_slab.reshape(-1)
    if tail_n:
        tail = flat[prefix:]
        tail_out = (jnp.maximum(jnp.zeros_like(tail), tail) ** k).astype(x.dtype)
        out_flat = jnp.concatenate([out_flat, tail_out])
    return out_flat.reshape(orig_shape)


def _reference(x, k):
    return (jnp.maximum(jnp.zeros_like(x), x) ** k).astype(x.dtype)


if __name__ == "__main__":
    key = jax.random.PRNGKey(0)

    # Primary: module-consistent NCHW input (n % 128 == 0 -> zero-copy path).
    x = jax.random.normal(key, (2, 4, 16, 16), dtype=jnp.float32)

    reluk1 = jax.jit(functools.partial(reluk_forward, k=1))
    reluk2 = jax.jit(functools.partial(reluk_forward, k=2))

    out = jax.block_until_ready(reluk1(x))
    ref = _reference(x, 1)
    assert out.shape == x.shape, (out.shape, x.shape)
    assert out.dtype == x.dtype, (out.dtype, x.dtype)
    assert jnp.allclose(out, ref, atol=1e-6, rtol=1e-6), float(jnp.max(jnp.abs(out - ref)))

    # k = 2 exercises the exponentiation-by-squaring path.
    out2 = jax.block_until_ready(reluk2(x))
    ref2 = _reference(x, 2)
    assert jnp.allclose(out2, ref2, atol=1e-5, rtol=1e-5), float(jnp.max(jnp.abs(out2 - ref2)))

    # Non-128-aligned input exercises the prefix + jnp-tail path (no pad copies).
    key2 = jax.random.PRNGKey(1)
    y = jax.random.normal(key2, (3, 7, 11), dtype=jnp.float32)   # 231 elements
    out3 = jax.block_until_ready(jax.jit(functools.partial(reluk_forward, k=3))(y))
    ref3 = _reference(y, 3)
    assert out3.shape == y.shape
    assert jnp.allclose(out3, ref3, atol=1e-5, rtol=1e-5), float(jnp.max(jnp.abs(out3 - ref3)))

    # bf16 exercises the 16-sublane tiling path.
    xb = x.astype(jnp.bfloat16)
    outb = jax.block_until_ready(jax.jit(functools.partial(reluk_forward, k=2))(xb))
    refb = _reference(xb, 2)
    assert outb.dtype == jnp.bfloat16
    assert jnp.allclose(outb.astype(jnp.float32), refb.astype(jnp.float32),
                        atol=2e-2, rtol=2e-2)

    print("KERNEL_OK")
</pallas_src>

<mosaic_0001>
module attributes {stable_mosaic.version = 11 : i64} {
  func.func @_kernel(%arg0: i32, %arg1: memref<2x1024xf32, #tpu.memory_space<vmem>>, %arg2: memref<2x1024xf32, #tpu.memory_space<vmem>>) attributes {dimension_semantics = [#tpu.dimension_semantics<parallel>], iteration_bounds = array<i64: 1>, scalar_prefetch = 0 : i64, scratch_operands = 0 : i64, tpu.core_type = #tpu.core_type<tc>, window_params = [{transform_indices = @transform_0, window_bounds = array<i64: 2, 1024>}, {transform_indices = @transform_1, window_bounds = array<i64: 2, 1024>}]} {
    %c0 = arith.constant 0 : index
    %c0_0 = arith.constant 0 : index
    %0 = vector.load %arg1[%c0, %c0_0] : memref<2x1024xf32, #tpu.memory_space<vmem>>, vector<2x1024xf32>
    %cst = arith.constant 0.000000e+00 : f32
    %1 = vector.broadcast %cst : f32 to vector<2x1024xf32>
    %2 = arith.maximumf %0, %1 : vector<2x1024xf32>
    %c0_1 = arith.constant 0 : index
    %c0_2 = arith.constant 0 : index
    %3 = vector.load %arg2[%c0_1, %c0_2] : memref<2x1024xf32, #tpu.memory_space<vmem>>, vector<2x1024xf32>
    tpu.vector_store %arg2[%c0_1, %c0_2], %2 {strides = array<i32>} : memref<2x1024xf32, #tpu.memory_space<vmem>>, vector<2x1024xf32>,
    return
  }
  func.func @transform_0(%arg0: i32) -> (i32, i32) {
    %c0_i32 = arith.constant 0 : i32
    %c0_i32_0 = arith.constant 0 : i32
    return %arg0, %c0_i32 : i32, i32
  }
  func.func @transform_1(%arg0: i32) -> (i32, i32) {
    %c0_i32 = arith.constant 0 : i32
    %c0_i32_0 = arith.constant 0 : i32
    return %arg0, %c0_i32 : i32, i32
  }
}

</mosaic_0001>

<bundles_post_ra>
// kernel: reluk_forward.1
= control target key start
LH: loop header
LB: loop body
LE: loop exit
PB: predicated region body
PF: predicated region fallthrough
CT: control target
= control target key end

     0   :  { %s40_s0 = inlined_call_operand.vmem [shape: f32[2,1024], index: 0, kind: input, shape index: {}]   ;;  %s41_s1 = inlined_call_operand.vmem [shape: f32[2,1024], index: 1, kind: output, shape index: {}]  }
   0x1   :  { %v8_v0 = vld [vmem:[%s40_s0] sm:$0xff]  ;;  %v9_v1 = vld [vmem:[%s40_s0 + $0x8] sm:$0xff] }
   0x2   :  { %v10_v2 = vmax.f32 %v8_v0, 0.0  ;;  %v11_v3 = vmax.f32 %v9_v1, 0.0 }
   0x4   :  { %12 = vst [vmem:[%s41_s1] sm:$0xff] %v10_v2  ;;  %13 = vst [vmem:[%s41_s1 + $0x8] sm:$0xff] %v11_v3 }

</bundles_post_ra>
